<compile_context>
chip_gen: v6e
topology: v6e:2x2x1
jax: 0.10.0
libtpu: 0.0.40
codegen_flags: <defaults>
</compile_context>

<pallas_src>
import jax
import jax.numpy as jnp
from jax.experimental import pallas as pl
from jax.experimental.pallas import tpu as pltpu

_LANE = 128
_SUBLANE = 8

# Conservative cross-generation VMEM settings:
#   v5e/v6e: 128 MiB physical (16/32 MiB scoped default), v7x: 64 MiB physical.
# A 48 MiB scoped limit is safe on every generation; tile working sets are
# budgeted below that to leave compiler headroom.
_VMEM_LIMIT_BYTES = 48 * 1024 * 1024
_VMEM_TILE_BUDGET = 36 * 1024 * 1024

# Live f32 copies of one block: input (double-buffered) + output
# (double-buffered) + the x_exp temporary.
_LIVE_COPIES = 5


# ----------------------------------------------------------------------------
# Tile selection helpers
# ----------------------------------------------------------------------------
def _col_tile_candidates(D):
    """Lane-dense (multiple of 128) divisors of D, widest first.
    Falls back to the full extent (always a legal block shape)."""
    cands = [t for t in range(_LANE, D + 1, _LANE) if D % t == 0]
    if not cands:
        return [D]
    return sorted(cands, reverse=True)


def _pick_col_tile_single_pass(N, D, budget):
    """Widest lane-dense column tile whose (N, tile_d) working set fits the
    budget, preferring >= 2 grid steps (v7x megacore). None -> doesn't fit."""
    per_lane_bytes = _LIVE_COPIES * N * 4
    fitting = [t for t in _col_tile_candidates(D) if t * per_lane_bytes <= budget]
    if not fitting:
        return None
    multi = [t for t in fitting if D // t >= 2]
    return max(multi) if multi else max(fitting)


def _pick_row_tile(N, tile_d, budget):
    """Largest sublane-aligned divisor of N whose (tile_n, tile_d) working set
    fits the budget."""
    per_row_bytes = _LIVE_COPIES * tile_d * 4
    cands = [t for t in range(_SUBLANE, N + 1, _SUBLANE) if N % t == 0]
    if not cands:
        cands = [N]
    fitting = [t for t in cands if t * per_row_bytes <= budget]
    return max(fitting) if fitting else min(cands)


# ----------------------------------------------------------------------------
# Single-pass kernel: full reduction axis resident per column block
# ----------------------------------------------------------------------------
def _softmax_dim0_kernel(x_ref, o_ref):
    # x_exp = exp(x); partition = x_exp.sum(0, keepdims=True); out = x_exp / partition
    x_exp = jnp.exp(x_ref[...].astype(jnp.float32))            # (N, tile_d)  EUP
    partition = jnp.sum(x_exp, axis=0, keepdims=True)          # (1, tile_d)  XLU
    inv = pl.reciprocal(partition, approx=False)                # 1 recip per lane
    o_ref[...] = (x_exp * inv).astype(o_ref.dtype)              # broadcast multiply


def _softmax_single_pass(x, tile_d):
    N, D = x.shape
    cost = pl.CostEstimate(
        flops=2 * N * D,
        transcendentals=N * D,
        bytes_accessed=2 * N * D * x.dtype.itemsize,
    )
    return pl.pallas_call(
        _softmax_dim0_kernel,
        out_shape=jax.ShapeDtypeStruct((N, D), x.dtype),
        grid_spec=pltpu.PrefetchScalarGridSpec(
            num_scalar_prefetch=0,
            grid=(D // tile_d,),
            in_specs=[pl.BlockSpec((N, tile_d), lambda j: (0, j))],
            out_specs=pl.BlockSpec((N, tile_d), lambda j: (0, j)),
        ),
        compiler_params=pltpu.CompilerParams(
            dimension_semantics=("parallel",),
            vmem_limit_bytes=_VMEM_LIMIT_BYTES,
        ),
        cost_estimate=cost,
    )(x)


# ----------------------------------------------------------------------------
# Two-pass fallback for large N (reduction axis tiled onto the grid)
# ----------------------------------------------------------------------------
def _partition_kernel(x_ref, part_ref):
    # Output block is resident across the (last, "arbitrary") N grid axis ->
    # acts as a (1, tile_d) f32 accumulator for the column sums.
    @pl.when(pl.program_id(1) == 0)
    def _():
        part_ref[...] = jnp.zeros_like(part_ref)

    part_ref[...] += jnp.sum(
        jnp.exp(x_ref[...].astype(jnp.float32)), axis=0, keepdims=True
    )


def _normalize_kernel(x_ref, part_ref, o_ref):
    inv = pl.reciprocal(part_ref[...], approx=False)            # (1, tile_d)
    o_ref[...] = (jnp.exp(x_ref[...].astype(jnp.float32)) * inv).astype(o_ref.dtype)


def _softmax_two_pass(x, tile_d, tile_n):
    N, D = x.shape
    grid = (D // tile_d, N // tile_n)  # reduction (row) axis last

    cost1 = pl.CostEstimate(
        flops=N * D,
        transcendentals=N * D,
        bytes_accessed=N * D * x.dtype.itemsize + D * 4,
    )
    partition = pl.pallas_call(
        _partition_kernel,
        out_shape=jax.ShapeDtypeStruct((1, D), jnp.float32),
        grid_spec=pltpu.PrefetchScalarGridSpec(
            num_scalar_prefetch=0,
            grid=grid,
            in_specs=[pl.BlockSpec((tile_n, tile_d), lambda j, k: (k, j))],
            out_specs=pl.BlockSpec((1, tile_d), lambda j, k: (0, j)),
        ),
        compiler_params=pltpu.CompilerParams(
            dimension_semantics=("parallel", "arbitrary"),
            vmem_limit_bytes=_VMEM_LIMIT_BYTES,
        ),
        cost_estimate=cost1,
    )(x)

    cost2 = pl.CostEstimate(
        flops=2 * N * D,
        transcendentals=N * D,
        bytes_accessed=2 * N * D * x.dtype.itemsize + D * 4,
    )
    return pl.pallas_call(
        _normalize_kernel,
        out_shape=jax.ShapeDtypeStruct((N, D), x.dtype),
        grid_spec=pltpu.PrefetchScalarGridSpec(
            num_scalar_prefetch=0,
            grid=grid,
            in_specs=[
                pl.BlockSpec((tile_n, tile_d), lambda j, k: (k, j)),
                pl.BlockSpec((1, tile_d), lambda j, k: (0, j)),
            ],
            out_specs=pl.BlockSpec((tile_n, tile_d), lambda j, k: (k, j)),
        ),
        compiler_params=pltpu.CompilerParams(
            dimension_semantics=("parallel", "parallel"),
            vmem_limit_bytes=_VMEM_LIMIT_BYTES,
        ),
        cost_estimate=cost2,
    )(x, partition)


# ----------------------------------------------------------------------------
# Public wrapper
# ----------------------------------------------------------------------------
def my_softmax(x, *, vmem_tile_budget_bytes=_VMEM_TILE_BUDGET):
    """Softmax over dim 0 (no max-subtraction), matching the PyTorch module.

    Accepts any rank >= 1; trailing dims are flattened into a single
    lane-major axis for the kernel and restored afterwards (layout plumbing
    only, no extra compute)."""
    assert x.ndim >= 1, "expected at least 1-D input; softmax is over dim 0"
    orig_shape = x.shape
    N = orig_shape[0]
    x2 = x.reshape(N, -1) if x.ndim != 2 else x
    D = x2.shape[1]

    tile_d = _pick_col_tile_single_pass(N, D, vmem_tile_budget_bytes)
    if tile_d is not None:
        out = _softmax_single_pass(x2, tile_d)
    else:
        # Large-N fallback: tile both axes; accumulate the partition sum over
        # the grid-tiled N axis, then re-exp and normalize in a second sweep.
        cands = _col_tile_candidates(D)       # widest first
        tile_d = cands[-1]                    # narrowest lane-dense divisor
        for t in cands:                       # widen while ~512 rows still fit
            if _LIVE_COPIES * min(N, 512) * t * 4 <= vmem_tile_budget_bytes:
                tile_d = t
                break
        tile_n = _pick_row_tile(N, tile_d, vmem_tile_budget_bytes)
        out = _softmax_two_pass(x2, tile_d, tile_n)

    return out.reshape(orig_shape)


# ----------------------------------------------------------------------------
def _ref_softmax(x):
    x_exp = jnp.exp(x)
    return x_exp / jnp.sum(x_exp, axis=0, keepdims=True)


if __name__ == "__main__":
    key = jax.random.PRNGKey(0)

    # Small shape consistent with the module: seq (reduction dim) = 8,
    # hidden = 256 (two 128-lane column tiles -> >= 2 parallel grid steps).
    x = jax.random.normal(key, (8, 256), dtype=jnp.float32)
    out = jax.block_until_ready(my_softmax(x))
    ref = _ref_softmax(x)
    assert out.shape == x.shape and out.dtype == x.dtype
    assert jnp.allclose(out, ref, atol=1e-6, rtol=1e-5)

    # Narrow hidden dim (32 < 128): exercises the full-extent column block.
    x1 = jax.random.normal(jax.random.PRNGKey(2), (8, 32), dtype=jnp.float32)
    out1 = jax.block_until_ready(my_softmax(x1))
    ref1 = _ref_softmax(x1)
    assert out1.shape == x1.shape and jnp.allclose(out1, ref1, atol=1e-6, rtol=1e-5)

    # Exercise the large-N two-pass fallback as well (forced via a tiny
    # artificial tile budget so it runs at small shapes).
    x2 = jax.random.normal(jax.random.PRNGKey(1), (64, 256), dtype=jnp.float32)
    out2 = jax.block_until_ready(my_softmax(x2, vmem_tile_budget_bytes=64 * 1024))
    ref2 = _ref_softmax(x2)
    assert out2.shape == x2.shape and out2.dtype == x2.dtype
    assert jnp.allclose(out2, ref2, atol=1e-6, rtol=1e-5)

    print("KERNEL_OK")
</pallas_src>

<mosaic_0001>
module attributes {stable_mosaic.version = 11 : i64} {
  func.func @_softmax_dim0_kernel(%arg0: i32, %arg1: memref<8x128xf32, #tpu.memory_space<vmem>>, %arg2: memref<8x128xf32, #tpu.memory_space<vmem>>) attributes {dimension_semantics = [#tpu.dimension_semantics<parallel>], iteration_bounds = array<i64: 2>, scalar_prefetch = 0 : i64, scratch_operands = 0 : i64, tpu.core_type = #tpu.core_type<tc>, window_params = [{transform_indices = @transform_0, window_bounds = array<i64: 8, 128>}, {transform_indices = @transform_1, window_bounds = array<i64: 8, 128>}]} {
    %c0 = arith.constant 0 : index
    %c0_0 = arith.constant 0 : index
    %0 = vector.load %arg1[%c0, %c0_0] : memref<8x128xf32, #tpu.memory_space<vmem>>, vector<8x128xf32>
    %1 = math.exp %0 : vector<8x128xf32>
    %cst = arith.constant dense<0.000000e+00> : vector<128xf32>
    %2 = vector.multi_reduction <add>, %1, %cst [0] : vector<8x128xf32> to vector<128xf32>
    %3 = vector.shape_cast %2 : vector<128xf32> to vector<1x128xf32>
    %4 = tpu.reciprocal %3 : vector<1x128xf32> -> vector<1x128xf32>
    %5 = vector.broadcast %4 : vector<1x128xf32> to vector<8x128xf32>
    %6 = arith.mulf %1, %5 : vector<8x128xf32>
    %c0_1 = arith.constant 0 : index
    %c0_2 = arith.constant 0 : index
    %7 = vector.load %arg2[%c0_1, %c0_2] : memref<8x128xf32, #tpu.memory_space<vmem>>, vector<8x128xf32>
    tpu.vector_store %arg2[%c0_1, %c0_2], %6 {strides = array<i32>} : memref<8x128xf32, #tpu.memory_space<vmem>>, vector<8x128xf32>,
    return
  }
  func.func @transform_0(%arg0: i32) -> (i32, i32) {
    %c0_i32 = arith.constant 0 : i32
    %c0_i32_0 = arith.constant 0 : i32
    return %c0_i32, %arg0 : i32, i32
  }
  func.func @transform_1(%arg0: i32) -> (i32, i32) {
    %c0_i32 = arith.constant 0 : i32
    %c0_i32_0 = arith.constant 0 : i32
    return %c0_i32, %arg0 : i32, i32
  }
}

</mosaic_0001>

<bundles_post_ra>
// kernel: tpu_custom_call.1
= control target key start
LH: loop header
LB: loop body
LE: loop exit
PB: predicated region body
PF: predicated region fallthrough
CT: control target
= control target key end

     0   :  { %6 = vsyncpa [#allocation3], 0  ;;  %s537_s0 = inlined_call_operand.hbm [shape: f32[8,256], index: 0, kind: input, shape index: {}]   ;;  %s538_s1 = inlined_call_operand.hbm [shape: f32[8,256], index: 1, kind: output, shape index: {}]  }
   0x1   :  { %8 = vsyncpa [#allocation3 + $0x1], 0 }
   0x2   :  { %9 = vsyncpa [#allocation4], 0 }
   0x3   :  { %11 = vsyncpa [#allocation4 + $0x1], 0  ;;  %s396_s6 = smov 0   ;;  %s398_s7 = smov 0  }
   0x4   :  { %s400_s8 = smov 0   ;;  %s402_s9 = smov 0  }
   0x5 LB: > { %s417_s10 = sadd.s32 4294967295, %s382_s9   ;;  %s228_s11 = sadd.s32 4294967294, %s382_s9   ;;  %s382_s9 = sphi %s402_s9, %s555_s9   ;;  %s378_s8 = sphi %s400_s8, %s554_s8   ;;  %s374_s7 = sphi %s398_s7, %s553_s7   ;;  %s370_s6 = sphi %s396_s6, %s552_s6  }
   0x6   : > { %s421_s12 = sadd.s32 1, %s382_s9   ;;  %s24_s13 = sadd.s32 1, %s378_s8 }
   0x7   : > { %s21_s14 = ssub.s32 %s382_s9, %s421_s12  ;;  %p31_p0 = scmp.ne.s32.totalorder %s378_s8, %s374_s7 }
   0x8   : > { %p22_p1 = scmp.eq.s32.totalorder %s21_s14, 0  ;;  %p32_p2 = scmp.eq.s32.totalorder %s382_s9, 0 }
   0x9   : > { %p37_p3 = scmp.ne.s32.totalorder %s374_s7, %s370_s6  ;;  %p38_p4 = scmp.eq.s32.totalorder %s417_s10, 0 }
   0xa   : > { %s433_s15 = scalar_select %p22_p1, %s378_s8, %s24_s13  }
   0xb   : > { %p435_p5 = por %p32_p2, %p31_p0  ;;  %p439_p6 = por %p38_p4, %p37_p3 }
   0xc   : > { %p61_p7 = scmp.eq.s32.totalorder %s417_s10, 1  ;;  %p67_p8 = scmp.eq.s32.totalorder %s228_s11, 1 }
   0xd   : > { %s542_s17 = scalar_select %p439_p6, 1, 0 }
   0xe   : > { %p252_p10 = scmp.lt.s32.totalorder %s382_s9, 2  ;;  %p446_p11 = por %p61_p7, %p31_p0 }
   0xf   : > { %p450_p12 = por %p67_p8, %p37_p3  ;;  %s87_s20 = sand.u32 1, %s378_s8  }
  0x10   : > { %s543_s18 = scalar_select %p446_p11, 1, 0 }
  0x11   : > { %s544_s19 = scalar_select %p450_p12, 1, 0 }
  0x12   : > { %s232_s21 = sshll.u32 %s382_s9, 7  ;;  %s231_s22 = sshll.u32 %s87_s20, 3 }
  0x13   : > { %s459_s25 = scalar_lea.hbm %s537_s0, %s232_s21  ;;  %s91_s26 = scalar_lea.vmem [#allocation2], %s231_s22 }
  0x14   : > { %s98_s27 = sshll.u32 %s91_s26, 4  ;;  %p463_p13 = pnand %p252_p10, %p435_p5  ;;  %s467_s27 = int_to_ptr.vmem [resolvable:$true] %s98_s27 }
  0x15   : > { %s88_s29 = scalar_lea.sflag [#allocation3], %s87_s20  ;;  %s290_s30 = scalar_lea.hbm %s459_s25, 128 }
  0x16   : > { %p291_p2 = scmp.ne.s32.totalorder %s459_s25, %s290_s30  ;;  %p292_p3 = pneg %p463_p13 }
  0x17   : > { %s295_s4 = scalar_lea.hbm %s537_s0, 256  ;;  %p296_p5 = scmp.lt.s32.totalorder %s459_s25, %s537_s0 }
  0x18   : > { %p293_p4 = pnand %p292_p3, %p291_p2  ;;  %p297_p8 = scmp.lt.s32.totalorder %s295_s4, %s290_s30 }
  0x1a   : > { %p294_p7 = pneg %p293_p4  ;;  %p298_p10 = por %p297_p8, %p296_p5 }
  0x1c   : > { %p299_p9 = pnand %p298_p10, %p294_p7 }
  0x1e   : > { %302 = shalt.err (!%p299_p9)
}
  0x1f   : > { %s303_s13 = scalar_lea.vmem %s467_s27, 128  ;;  %s384_s14 = smov [#allocation2]  }
  0x20   : > { %p304_p0 = scmp.ne.s32.totalorder %s467_s27, %s303_s13  ;;  %s308_s16 = sshll.u32 %s384_s14, 4  ;;  %s309_s16 = int_to_ptr.vmem [resolvable:$false] %s308_s16 }
  0x21   : > { %s310_s20 = scalar_lea.vmem %s309_s16, 256  ;;  %p311_p4 = scmp.lt.s32.totalorder %s467_s27, %s309_s16 }
  0x22   : > { %p306_p1 = pnand %p304_p0, %p292_p3  ;;  %p312_p12 = scmp.lt.s32.totalorder %s310_s20, %s303_s13 }
  0x24   : > { %p307_p2 = pneg %p306_p1  ;;  %p313_p11 = por %p312_p12, %p311_p4 }
  0x26   : > { %p314_p6 = pnand %p313_p11, %p307_p2 }
  0x28   : > { %317 = shalt.err (!%p314_p6)
}
  0x29   : > { %247 = dma.hbm_to_vmem [thread:$0]  (!%p463_p13), %s459_s25, 128, %s467_s27, %s88_s29  }
  0x2a   : > { %p546_p9 = scmp.lt.s32.totalorder %s382_s9, 3  ;;  %p547_p7 = scmp.ge.s32.totalorder %s382_s9, 1 }
  0x2c   : > { %p104_p0 = pnand %p547_p7, %p546_p9 }
  0x2d   : > { %s494_s21 = sand.u32 (!%p104_p0), 1, %s374_s7   ;;  %p548_p6 = scmp.ne.s32.totalorder (!%p104_p0), %s542_s17, 0 }
  0x2e   : > { %107 = sbr.rel (%p104_p0) target bundleno = 110 (0x6e), region = 24  ;;  %s234_s22 = sshll.u32 (!%p104_p0), %s494_s21, 3 }
  0x2f   : > { %s110_s23 = scalar_lea.sflag (!%p104_p0), [#allocation3], %s494_s21  ;;  %s113_s24 = scalar_lea.vmem (!%p104_p0), [#allocation2], %s234_s22 }
  0x33   : > { %361 = dma.done.wait (%p548_p6), %s110_s23, 128  }
  0x34   : > { %363 = vsyncadd (%p548_p6), %s110_s23, 4294967168  ;;  %v132_v0 = vld [vmem:[%s113_s24] sm:$0xff]  ;;  %s131_s25 = scalar_lea.vmem [#allocation5], %s234_s22  ;;  %s237_s27 = sshll.u32 %s417_s10, 7 }
  0x35   : > { %v133_v1 = vmul.f32 1.442695, %v132_v0  ;;  %s158_s26 = sshll.u32 %s131_s25, 4  ;;  %s156_s29 = scalar_lea.hbm %s538_s1, %s237_s27  ;;  %s159_s26 = int_to_ptr.vmem [resolvable:$true] %s158_s26 }
  0x36   : > { %s145_s30 = scalar_lea.sflag [#allocation4], %s494_s21  ;;  %s318_s2 = scalar_lea.vmem %s159_s26, 128 }
  0x37   : > { %286 = vpow2.f32 %v133_v1  ;;  %p319_p11 = scmp.ne.s32.totalorder %s159_s26, %s318_s2  ;;  %p549_p12 = scmp.ne.s32.totalorder %s543_s18, 0 }
  0x38   : > { %s385_s3 = smov [#allocation5]  }
  0x39   : > { %p320_p13 = pnand %p319_p11, %p549_p12  ;;  %s322_s4 = sshll.u32 %s385_s3, 4  ;;  %s323_s4 = int_to_ptr.vmem [resolvable:$false] %s322_s4 }
  0x3a   : > { %s324_s5 = scalar_lea.vmem %s323_s4, 256  ;;  %p325_p3 = scmp.lt.s32.totalorder %s159_s26, %s323_s4 }
  0x3b   : > { %p321_p1 = pneg %p320_p13  ;;  %p326_p5 = scmp.lt.s32.totalorder %s324_s5, %s318_s2 }
  0x3d   : > { %p327_p8 = por %p326_p5, %p325_p3 }
  0x3f   : > { %p328_p10 = pnand %p327_p8, %p321_p1 }
  0x44   : > { %v287_v2 = vpop.eup %286 }
  0x45   : > { %v135_v3 = vrot.slane %v287_v2, 4 }
  0x47   : > { %v136_v4 = vadd.f32 %v287_v2, %v135_v3 }
  0x49   : > { %v137_v5 = vrot.slane %v136_v4, 2 }
  0x4b   : > { %v138_v6 = vadd.f32 %v137_v5, %v136_v4 }
  0x4d   : > { %v139_v7 = vrot.slane %v138_v6, 1 }
  0x4f   : > { %v140_v8 = vadd.f32 %v139_v7, %v138_v6 }
  0x51   : > { %288 = vrcp.f32 %v140_v8 }
  0x5e   : > { %v289_v9 = vpop.eup %288 }
  0x5f   : > { %v142_v10 = vmul.f32 %v289_v9, %v287_v2 }
  0x61   : > { %143 = vst [vmem:[%s131_s25] sm:$0xff] %v142_v10 }
  0x62   : > { %331 = shalt.err (!%p328_p10)
}
  0x63   : > { %s332_s10 = scalar_lea.hbm %s156_s29, 128  ;;  %s336_s14 = scalar_lea.hbm %s538_s1, 256 }
  0x64   : > { %p333_p2 = scmp.ne.s32.totalorder %s156_s29, %s332_s10  ;;  %p337_p7 = scmp.lt.s32.totalorder %s156_s29, %s538_s1 }
  0x65   : > { %p338_p0 = scmp.lt.s32.totalorder %s336_s14, %s332_s10 }
  0x66   : > { %p334_p4 = pnand %p333_p2, %p549_p12 }
  0x67   : > { %p339_p6 = por %p338_p0, %p337_p7 }
  0x68   : > { %p335_p9 = pneg %p334_p4 }
  0x6a   : > { %p340_p11 = pnand %p339_p6, %p335_p9 }
  0x6c   : > { %343 = shalt.err (!%p340_p11)
}
  0x6d   : > { %242 = dma.vmem_to_hbm [thread:$0]  (%p549_p12), %s159_s26, 128, %s156_s29, %s145_s30  }
  0x6e PF: > { %s170_s21 = sand.u32 1, %s370_s6   ;;  %p550_p13 = scmp.ne.s32.totalorder %s544_s19, 0 }
  0x6f   : > { %p551_p1 = scmp.ge.s32.totalorder %s382_s9, 2  ;;  %s171_s22 = scalar_lea.sflag [#allocation4], %s170_s21 }
  0x71   : > { %p249_p3 = pnand %p551_p1, %p550_p13 }
  0x73   : > { %p250_p5 = pneg %p249_p3 }
  0x75   : > { %365 = dma.done.wait (%p250_p5), %s171_s22, 128  }
  0x76   : > { %367 = vsyncadd (%p250_p5), %s171_s22, 4294967168  ;;  %p14_p8 = scmp.ge.s32.totalorder %s421_s12, 4   ;;  %s552_s6 = smov %s374_s7 }
  0x77   : > { %s553_s7 = smov %s378_s8  ;;  %s554_s8 = smov %s433_s15 }
  0x78   : > { %s555_s9 = smov %s421_s12  ;;  %16 = sbr.rel (!%p14_p8) target bundleno = 5 (0x5), region = 69 }
  0x7d   :  { %176 = vsyncpa [#allocation3], 1 }
  0x7e   :  { %178 = vsyncpa [#allocation3 + $0x1], 1 }
  0x7f   :  { %179 = vsyncpa [#allocation4], 1 }
  0x80   :  { %181 = vsyncpa [#allocation4 + $0x1], 1 }

</bundles_post_ra>
